<compile_context>
chip_gen: v5e
topology: v5e:2x2
jax: 0.10.0
libtpu: 0.0.40
codegen_flags: <defaults>
</compile_context>

<pallas_src>
import jax
import jax.numpy as jnp
from jax.experimental import pallas as pl
from jax.experimental.pallas import tpu as pltpu


# --------------------------------------------------------------------------- #
# Tiling helpers
# --------------------------------------------------------------------------- #
_LANE_CHOICES = (1024, 512, 256, 128)   # lane-dense last dim (multiple of 128)
_MIN_GRID_STEPS = 4                     # keep the pipeline busy + 2 blocks per TC (v7x)


def _vmem_budget_bytes():
    """Generation-aware budget for the double-buffered streaming working set."""
    cap = None
    try:
        cap = getattr(pltpu.get_tpu_info(), "vmem_capacity_bytes", None)
    except Exception:
        cap = None
    if not cap:
        cap = 64 << 20                  # conservative default (v7x physical VMEM)
    # ~24 MiB on v5e/v6e (128 MiB physical), ~21 MiB on v7x (64 MiB physical)
    return min(24 << 20, cap // 3)


def _sublane_pack(min_itemsize):
    # packed-sublane multiple: f32 -> 8, bf16 -> 16, int8/fp8 -> 32
    return 8 * max(4 // int(min_itemsize), 1)


def _choose_lanes(n, pack):
    """Largest lane width that still leaves enough rows for a multi-step grid."""
    for lanes in _LANE_CHOICES:
        if n % lanes == 0 and (n // lanes) >= _MIN_GRID_STEPS * pack:
            return lanes
    for lanes in _LANE_CHOICES:         # small tensors: fall back to widest divisor
        if n % lanes == 0:
            return lanes
    return None


def _pick_block_rows(rows, lanes, n_streams, pack, budget):
    """Row tile: big enough to amortize per-step overhead, small enough to keep
    >= _MIN_GRID_STEPS grid steps, sized against the f32 (upcast) footprint."""
    per_buffer = max(budget // (n_streams * 2), lanes * 4 * pack)
    block_rows = per_buffer // (lanes * 4)                 # f32 footprint per buffer
    block_rows = min(block_rows, max(rows // _MIN_GRID_STEPS, pack))
    block_rows = max((block_rows // pack) * pack, pack)
    if block_rows >= rows:
        return rows        # tiny input: one full-extent block (legal block shape)
    return block_rows


# --------------------------------------------------------------------------- #
# Pallas kernel: out = (sum of all input tiles) * lam   (elementwise)
# --------------------------------------------------------------------------- #
def _pallas_fused_add(flats, lam, out_dtype):
    """flats: list of 1-D arrays, equal length n, n % 128 == 0."""
    n = int(flats[0].shape[0])
    itemsizes = [jnp.dtype(f.dtype).itemsize for f in flats] + [
        jnp.dtype(out_dtype).itemsize
    ]
    pack = _sublane_pack(min(itemsizes))
    lanes = _choose_lanes(n, pack)
    assert lanes is not None, n
    rows = n // lanes

    n_streams = len(flats) + 1                  # inputs + output
    budget = _vmem_budget_bytes()
    block_rows = _pick_block_rows(rows, lanes, n_streams, pack, budget)
    num_blocks = pl.cdiv(rows, block_rows)      # partial last block is masked by Pallas

    # Explicit scoped-VMEM limit sized from the planned (f32) footprint + headroom.
    footprint = n_streams * 2 * block_rows * lanes * 4
    vmem_limit = int(min(max(footprint * 3 // 2 + (4 << 20), 16 << 20), 40 << 20))

    arrs2d = [f.reshape(rows, lanes) for f in flats]   # free reshape, lane-dense slab
    lam_arr = jnp.full((1,), lam, dtype=jnp.float32)   # SMEM scalar operand (no capture)
    num_inputs = len(flats)

    def kernel(lam_ref, *refs):
        out_ref = refs[num_inputs]
        acc = refs[0][...].astype(jnp.float32)
        for idx in range(1, num_inputs):
            acc = acc + refs[idx][...].astype(jnp.float32)
        out_ref[...] = (acc * lam_ref[0]).astype(out_ref.dtype)

    out = pl.pallas_call(
        kernel,
        out_shape=jax.ShapeDtypeStruct((rows, lanes), out_dtype),
        grid_spec=pltpu.PrefetchScalarGridSpec(
            num_scalar_prefetch=0,
            grid=(num_blocks,),
            in_specs=[pl.BlockSpec(memory_space=pltpu.MemorySpace.SMEM)]
            + [
                pl.BlockSpec((block_rows, lanes), lambda i: (i, 0))
                for _ in flats
            ],
            out_specs=pl.BlockSpec((block_rows, lanes), lambda i: (i, 0)),
        ),
        compiler_params=pltpu.CompilerParams(
            # independent output blocks -> megacore can shard across TCs (v7x)
            dimension_semantics=("parallel",),
            vmem_limit_bytes=vmem_limit,
        ),
    )(lam_arr, *arrs2d)
    return out.reshape(n)


def _jnp_fused_add(flats, lam, out_dtype):
    if jnp.issubdtype(out_dtype, jnp.floating):
        acc = flats[0].astype(jnp.float32)
        for f in flats[1:]:
            acc = acc + f.astype(jnp.float32)
        return (acc * jnp.float32(lam)).astype(out_dtype)
    acc = flats[0]
    for f in flats[1:]:
        acc = acc + f
    return (acc * lam).astype(out_dtype)


def _fused_add(flats, lam, out_dtype):
    n = int(flats[0].shape[0])
    if n < 128 or n % 128 != 0 or not jnp.issubdtype(out_dtype, jnp.floating):
        # TODO(synk): non-lane-aligned (n % 128 != 0) or integer-dtype inputs use a
        # single fused XLA pass instead of Pallas (same HBM traffic, no extra copy).
        return _jnp_fused_add(flats, lam, out_dtype)
    return _pallas_fused_add(flats, lam, out_dtype)


# --------------------------------------------------------------------------- #
# SumLoss.forward equivalent
# --------------------------------------------------------------------------- #
def sum_loss(input1, input2, lam=1.0):
    """Pallas-backed equivalent of SumLoss.forward: sum_k (in1_k + in2_k) * lam."""
    in1 = input1 if isinstance(input1, list) else [input1]
    in2 = input2 if isinstance(input2, list) else [input2]
    assert len(in1) == len(in2), (len(in1), len(in2))

    pairs = [(jnp.asarray(a), jnp.asarray(b)) for a, b in zip(in1, in2)]

    same_shape = (
        all(a.shape == b.shape for a, b in pairs)
        and len({a.shape for a, _ in pairs}) == 1
    )
    if not same_shape:
        # TODO(synk): differently-shaped / broadcasting pairs fall back to plain XLA,
        # mirroring the original torch accumulation (requires mutual broadcastability).
        loss = 0
        for a, b in pairs:
            loss = loss + (a + b) * lam
        return loss

    shape = pairs[0][0].shape
    flats = []
    for a, b in pairs:
        flats.append(a.reshape(-1))      # native dtype, no cast / no pad in wrapper
        flats.append(b.reshape(-1))
    # include lam in promotion: int inputs * float lam -> float output (PyTorch-like)
    out_dtype = jnp.result_type(*([f.dtype for f in flats] + [lam]))

    out_flat = _fused_add(flats, lam, out_dtype)
    return out_flat.reshape(shape)


# --------------------------------------------------------------------------- #
# Demo / self-check
# --------------------------------------------------------------------------- #
if __name__ == "__main__":
    key = jax.random.PRNGKey(0)
    k1, k2, k3, k4, k5, k6 = jax.random.split(key, 6)

    lam = 0.5

    # single-tensor path (NCHW-like features)
    x1 = jax.random.normal(k1, (2, 4, 16, 16), dtype=jnp.float32)
    x2 = jax.random.normal(k2, (2, 4, 16, 16), dtype=jnp.float32)
    out_single = jax.block_until_ready(sum_loss(x1, x2, lam=lam))
    ref_single = (x1 + x2) * lam
    assert out_single.shape == ref_single.shape, (out_single.shape, ref_single.shape)
    assert jnp.allclose(out_single, ref_single, rtol=1e-6, atol=1e-6)

    # list path: two same-shaped pairs fused into one pallas_call
    y1 = jax.random.normal(k3, (2, 4, 16, 16), dtype=jnp.float32)
    y2 = jax.random.normal(k4, (2, 4, 16, 16), dtype=jnp.float32)
    out_list = jax.block_until_ready(sum_loss([x1, y1], [x2, y2], lam=lam))
    ref_list = (x1 + x2) * lam + (y1 + y2) * lam
    assert jnp.allclose(out_list, ref_list, rtol=1e-6, atol=1e-5)

    # native bf16 path (no wrapper-side casts; kernel upcasts per tile)
    xb1 = x1.astype(jnp.bfloat16)
    xb2 = x2.astype(jnp.bfloat16)
    out_bf16 = jax.block_until_ready(sum_loss(xb1, xb2, lam=lam))
    ref_bf16 = ((xb1.astype(jnp.float32) + xb2.astype(jnp.float32)) * lam).astype(
        jnp.bfloat16
    )
    assert out_bf16.dtype == jnp.bfloat16
    assert jnp.allclose(
        out_bf16.astype(jnp.float32), ref_bf16.astype(jnp.float32),
        rtol=1e-2, atol=1e-2,
    )

    # larger tensor: exercises the multi-block, pipelined grid path
    z1 = jax.random.normal(k5, (8, 4, 32, 32), dtype=jnp.float32)
    z2 = jax.random.normal(k6, (8, 4, 32, 32), dtype=jnp.float32)
    out_big = jax.block_until_ready(sum_loss(z1, z2, lam=lam))
    assert jnp.allclose(out_big, (z1 + z2) * lam, rtol=1e-6, atol=1e-6)

    # ragged (non-multiple-of-128) shape: fused XLA fallback path
    r1 = jax.random.normal(k1, (3, 5), dtype=jnp.float32)
    r2 = jax.random.normal(k2, (3, 5), dtype=jnp.float32)
    out_ragged = jax.block_until_ready(sum_loss(r1, r2, lam=lam))
    assert jnp.allclose(out_ragged, (r1 + r2) * lam, rtol=1e-6, atol=1e-6)

    print("KERNEL_OK")
</pallas_src>

<mosaic_0001>
module attributes {stable_mosaic.version = 11 : i64} {
  func.func @kernel(%arg0: i32, %arg1: memref<1xf32, #tpu.memory_space<smem>>, %arg2: memref<2x1024xf32, #tpu.memory_space<vmem>>, %arg3: memref<2x1024xf32, #tpu.memory_space<vmem>>, %arg4: memref<2x1024xf32, #tpu.memory_space<vmem>>) attributes {dimension_semantics = [#tpu.dimension_semantics<parallel>], iteration_bounds = array<i64: 1>, scalar_prefetch = 0 : i64, scratch_operands = 0 : i64, tpu.core_type = #tpu.core_type<tc>, window_params = [{transform_indices = @transform_0, window_bounds = array<i64: 1>}, {transform_indices = @transform_1, window_bounds = array<i64: 2, 1024>}, {transform_indices = @transform_2, window_bounds = array<i64: 2, 1024>}, {transform_indices = @transform_3, window_bounds = array<i64: 2, 1024>}]} {
    %c0 = arith.constant 0 : index
    %c0_0 = arith.constant 0 : index
    %0 = vector.load %arg2[%c0, %c0_0] : memref<2x1024xf32, #tpu.memory_space<vmem>>, vector<2x1024xf32>
    %c0_1 = arith.constant 0 : index
    %c0_2 = arith.constant 0 : index
    %1 = vector.load %arg3[%c0_1, %c0_2] : memref<2x1024xf32, #tpu.memory_space<vmem>>, vector<2x1024xf32>
    %2 = arith.addf %0, %1 : vector<2x1024xf32>
    %c0_3 = arith.constant 0 : index
    %3 = memref.load %arg1[%c0_3] : memref<1xf32, #tpu.memory_space<smem>>
    %4 = vector.broadcast %3 : f32 to vector<2x1024xf32>
    %5 = arith.mulf %2, %4 : vector<2x1024xf32>
    %c0_4 = arith.constant 0 : index
    %c0_5 = arith.constant 0 : index
    %6 = vector.load %arg4[%c0_4, %c0_5] : memref<2x1024xf32, #tpu.memory_space<vmem>>, vector<2x1024xf32>
    tpu.vector_store %arg4[%c0_4, %c0_5], %5 {strides = array<i32>} : memref<2x1024xf32, #tpu.memory_space<vmem>>, vector<2x1024xf32>,
    return
  }
  func.func @transform_0(%arg0: i32) -> i32 {
    %c0_i32 = arith.constant 0 : i32
    %c0_i32_0 = arith.constant 0 : i32
    return %c0_i32 : i32
  }
  func.func @transform_1(%arg0: i32) -> (i32, i32) {
    %c0_i32 = arith.constant 0 : i32
    %c0_i32_0 = arith.constant 0 : i32
    return %arg0, %c0_i32 : i32, i32
  }
  func.func @transform_2(%arg0: i32) -> (i32, i32) {
    %c0_i32 = arith.constant 0 : i32
    %c0_i32_0 = arith.constant 0 : i32
    return %arg0, %c0_i32 : i32, i32
  }
  func.func @transform_3(%arg0: i32) -> (i32, i32) {
    %c0_i32 = arith.constant 0 : i32
    %c0_i32_0 = arith.constant 0 : i32
    return %arg0, %c0_i32 : i32, i32
  }
}

</mosaic_0001>

<bundles_post_ra>
// kernel: tpu_custom_call.1
= control target key start
LH: loop header
LB: loop body
LE: loop exit
PB: predicated region body
PF: predicated region fallthrough
CT: control target
= control target key end

     0   :  { %9 = vsyncpa [#allocation4], 0  ;;  %s190_s0 = inlined_call_operand.<no memory space> [shape: f32[1], index: 0, kind: input, shape index: {}]   ;;  %s191_s1 = inlined_call_operand.hbm [shape: f32[2,1024], index: 1, kind: input, shape index: {}]   ;;  %s192_s2 = inlined_call_operand.hbm [shape: f32[2,1024], index: 2, kind: input, shape index: {}]   ;;  %s193_s3 = inlined_call_operand.hbm [shape: f32[2,1024], index: 3, kind: output, shape index: {}]  }
   0x1   :  { %10 = vsyncpa [#allocation7], 0 }
   0x2   :  { %11 = vsyncpa [#allocation5], 0  ;;  %s19_s14 = sshll.u32 %s191_s1, 4  ;;  %s155_s15 = smov [#allocation3]   ;;  %s20_s14 = int_to_ptr.hbm [resolvable:$true] %s19_s14 }
   0x3   :  { %s21_s16 = sshll.u32 %s155_s15, 4  ;;  %s30_s19 = sshll.u32 %s192_s2, 4  ;;  %s22_s16 = int_to_ptr.vmem [resolvable:$true] %s21_s16  ;;  %s31_s19 = int_to_ptr.hbm [resolvable:$true] %s30_s19 }
   0x4   :  { %24 = dma.hbm_to_vmem [thread:$0]  %s20_s14, 256, %s22_s16, [#allocation4]  }
   0x5   :  { %s156_s20 = smov [#allocation6]  }
   0x6   :  { %s32_s21 = sshll.u32 %s156_s20, 4  ;;  %s33_s21 = int_to_ptr.vmem [resolvable:$true] %s32_s21 }
   0x7   :  { %35 = dma.hbm_to_vmem [thread:$0]  %s31_s19, 256, %s33_s21, [#allocation7]  }
   0x8   :  { %149 = dma.done.wait [#allocation4], 256  }
   0x9   :  { %150 = vsyncadd [#allocation4], 4294967040 }
   0xa   :  { %151 = dma.done.wait [#allocation7], 256  }
   0xb   :  { %152 = vsyncadd [#allocation7], 4294967040  ;;  %v44_v0 = vld [vmem:[#allocation3] sm:$0xff]  ;;  %v46_v1 = vld [vmem:[#allocation6] sm:$0xff]  ;;  %v51_v2 = vstv %s190_s0  ;;  %s157_s2 = smov [#allocation8]   ;;  %s63_s26 = sshll.u32 %s193_s3, 4  ;;  %s64_s26 = int_to_ptr.hbm [resolvable:$true] %s63_s26 }
   0xc   :  { %v45_v3 = vld [vmem:[#allocation3 + $0x8] sm:$0xff]  ;;  %v48_v4 = vadd.f32 %v46_v1, %v44_v0  ;;  %v47_v5 = vld [vmem:[#allocation6 + $0x8] sm:$0xff]  ;;  %s61_s23 = sshll.u32 %s157_s2, 4  ;;  %s62_s23 = int_to_ptr.vmem [resolvable:$true] %s61_s23 }
   0xd   :  { %v49_v6 = vadd.f32 %v47_v5, %v45_v3 }
   0xe   :  { %v52_v7 = vmul.f32 %v51_v2, %v48_v4 }
   0xf   :  { %v53_v8 = vmul.f32 %v51_v2, %v49_v6 }
  0x10   :  { %54 = vst [vmem:[#allocation8] sm:$0xff] %v52_v7 }
  0x11   :  { %55 = vst [vmem:[#allocation8 + $0x8] sm:$0xff] %v53_v8 }
  0x12   :  { %66 = dma.vmem_to_hbm [thread:$0]  %s62_s23, 256, %s64_s26, [#allocation5]  }
  0x13   :  { %153 = dma.done.wait [#allocation5], 256  }
  0x14   :  { %154 = vsyncadd [#allocation5], 4294967040 }
  0x15   :  { %71 = vsyncpa [#allocation4], 1 }
  0x16   :  { %72 = vsyncpa [#allocation7], 1 }
  0x17   :  { %73 = vsyncpa [#allocation5], 1 }

</bundles_post_ra>
